<compile_context>
chip_gen: v7x
topology: tpu7x:2x2x1
jax: 0.10.0
libtpu: 0.0.40
codegen_flags: <defaults>
</compile_context>

<pallas_src>
import math

import jax
import jax.numpy as jnp
from jax import lax
from jax.experimental import pallas as pl
from jax.experimental.pallas import tpu as pltpu


def _round_up(x: int, m: int) -> int:
    return ((x + m - 1) // m) * m


def _make_kernel(radius: float, tm: int, tc: int):
    neg2r = -2.0 * float(radius)

    def kernel(feat_ref, cent_ref, lab_ref, logits_ref, loss_ref):
        j = pl.program_id(1)

        f = feat_ref[...]                                  # [TM, Dp] bf16
        c = cent_ref[...]                                  # [TC, Dp] bf16

        # logits tile = f @ c.T (contract last dims: no materialized transpose),
        # bf16 MXU inputs, f32 accumulation.
        logits = lax.dot_general(
            f, c,
            dimension_numbers=(((1,), (1,)), ((), ())),
            preferred_element_type=jnp.float32,
        )                                                  # [TM, TC] f32
        logits_ref[...] = logits.astype(logits_ref.dtype)

        # Selected-class logit via one-hot mask (labels == -1 on padded rows
        # match nothing, so padded rows contribute exactly 0).
        labels = lab_ref[...]                              # [TM, 1] int32
        cls_ids = lax.broadcasted_iota(jnp.int32, (tm, tc), 1) + j * tc
        onehot = (cls_ids == labels).astype(jnp.float32)   # [TM, TC]
        sel_logit = jnp.sum(logits * onehot, axis=1, keepdims=True)  # [TM, 1]

        # The loss output block index is constant across the class axis, so the
        # output buffer itself is the accumulator: init at j == 0, += each step.
        @pl.when(j == 0)
        def _init():
            ff = f.astype(jnp.float32)
            loss_ref[...] = jnp.sum(ff * ff, axis=1, keepdims=True)   # ||f||^2

        loss_ref[...] += neg2r * sel_logit                 # - 2r * <f, c_label>

    return kernel


def j1_3_forward(features, centers, labels, radius: float,
                 logits_dtype=jnp.float32):
    """JAX wrapper mirroring the reviewed forward: (gring_loss, logits, None).

    `logits_dtype=jnp.bfloat16` halves the dominant B*C logits write (worth ~2x
    end-to-end on bandwidth-starved v5e) if the consumer tolerates bf16.
    """
    B, D = features.shape
    C, _ = centers.shape
    r = float(radius)

    # Lane/sublane friendly padded shapes; Cp padded to 256 so N tiles use the
    # full MXU width on v6e/v7x.
    Dp = _round_up(D, 128)
    Cp = _round_up(C, 256)

    # Batch tile: as large as practical (amortize ~0.35us/step overhead, avoid
    # re-streaming centers), but keep n_bm >= 2 when B allows so both v7x
    # TensorCores get work on the "parallel" axis.
    if B <= 8:
        TM = 8
    else:
        TM = min(512, _round_up((B + 1) // 2, 8))

    def vmem_bytes(tm, tc):
        # double-buffered: bf16 feature + centers tiles, f32 logits tile, loss col
        return 2 * (tm * Dp * 2 + tc * Dp * 2 + tm * tc * 4 + tm * 4)

    VMEM_BUDGET = 40 * 1024 * 1024     # headroom inside v7x's 64 MiB physical VMEM
    if vmem_bytes(TM, Cp) <= VMEM_BUDGET:
        TC = Cp                        # whole centers matrix stays VMEM-resident
    else:
        TC = 512 if Cp % 512 == 0 else 256
        while vmem_bytes(TM, TC) > VMEM_BUDGET and TM > 8:
            TM = max(8, _round_up(TM // 2, 8))

    Bp = _round_up(B, TM)
    n_bm, n_cn = Bp // TM, Cp // TC

    # Inputs in bf16 (halves HBM traffic); skip the pad copy when already aligned.
    f_in = features.astype(jnp.bfloat16)
    c_in = centers.astype(jnp.bfloat16)
    lab32 = labels.astype(jnp.int32)

    f_p = f_in if (Bp, Dp) == (B, D) else (
        jnp.zeros((Bp, Dp), jnp.bfloat16).at[:B, :D].set(f_in))
    c_p = c_in if (Cp, Dp) == (C, D) else (
        jnp.zeros((Cp, Dp), jnp.bfloat16).at[:C, :D].set(c_in))
    l_p = lab32.reshape(B, 1) if Bp == B else (
        jnp.full((Bp, 1), -1, jnp.int32).at[:B, 0].set(lab32))

    kernel = _make_kernel(r, TM, TC)

    cost = pl.CostEstimate(
        flops=2 * Bp * Cp * Dp,
        transcendentals=0,
        bytes_accessed=(Bp * Dp + Cp * Dp) * 2
        + Bp * Cp * jnp.dtype(logits_dtype).itemsize
        + Bp * 4 * 2,
    )

    logits_p, loss_rows = pl.pallas_call(
        kernel,
        grid=(n_bm, n_cn),
        in_specs=[
            pl.BlockSpec((TM, Dp), lambda i, j: (i, 0)),   # features tile (bf16)
            pl.BlockSpec((TC, Dp), lambda i, j: (j, 0)),   # centers tile (bf16)
            pl.BlockSpec((TM, 1), lambda i, j: (i, 0)),    # labels column
        ],
        out_specs=(
            pl.BlockSpec((TM, TC), lambda i, j: (i, j)),   # logits (lane-dense)
            pl.BlockSpec((TM, 1), lambda i, j: (i, 0)),    # per-row loss partials
        ),
        out_shape=(
            jax.ShapeDtypeStruct((Bp, Cp), logits_dtype),
            jax.ShapeDtypeStruct((Bp, 1), jnp.float32),
        ),
        compiler_params=pltpu.CompilerParams(
            dimension_semantics=("parallel", "arbitrary"),
            vmem_limit_bytes=48 * 1024 * 1024,
        ),
        cost_estimate=cost,
    )(f_p, c_p, l_p)

    logits = logits_p if (Bp, Cp) == (B, C) else logits_p[:B, :C]

    # r^2 * ||c_label||^2 term hoisted out of the kernel (O(C*D) once, in f32).
    csq = jnp.sum(centers.astype(jnp.float32) ** 2, axis=1)        # [C]
    sel_csq = jnp.sum(jnp.take(csq, lab32, axis=0))                # scalar
    row_sum = jnp.sum(loss_rows)                                   # padded rows are 0
    gring_loss = 0.5 * (row_sum + r * r * sel_csq) / (B * D)
    return gring_loss, logits, None


def xavier_uniform(key, shape, dtype=jnp.float32):
    """Matches torch.nn.init.xavier_uniform_ for a 2-D tensor (gain=1)."""
    fan_out, fan_in = shape
    bound = math.sqrt(6.0 / (fan_in + fan_out))
    return jax.random.uniform(key, shape, dtype, minval=-bound, maxval=bound)


if __name__ == "__main__":
    # Small deterministic example.
    num_classes = 4
    feat_dim = 32
    batch = 8
    radius = 2.5

    key = jax.random.PRNGKey(0)
    k_feat, k_centers, k_labels = jax.random.split(key, 3)

    features = jax.random.normal(k_feat, (batch, feat_dim), dtype=jnp.float32)
    centers = xavier_uniform(k_centers, (num_classes, feat_dim))
    labels = jax.random.randint(k_labels, (batch,), 0, num_classes)

    gring_loss, logits, _ = j1_3_forward(features, centers, labels, radius)
    jax.block_until_ready((gring_loss, logits))

    # Pure-JAX f32 reference (same math as the module's reviewed forward).
    ref_logits = jnp.dot(features, centers.T, precision=jax.lax.Precision.HIGHEST)
    ref_loss = 0.5 * jnp.mean((features - radius * centers[labels]) ** 2)

    # Tolerances account for bf16 MXU inputs (~3 decimal digits on logits).
    assert bool(jnp.allclose(logits, ref_logits, atol=3e-2, rtol=2e-2)), "logits mismatch"
    assert bool(jnp.allclose(gring_loss, ref_loss, atol=1e-2, rtol=1e-2)), "loss mismatch"

    print("KERNEL_OK")
</pallas_src>

<mosaic_0001>
module attributes {stable_mosaic.version = 11 : i64} {
  func.func @kernel(%arg0: i32, %arg1: i32, %arg2: memref<8x128xbf16, #tpu.memory_space<vmem>>, %arg3: memref<256x128xbf16, #tpu.memory_space<vmem>>, %arg4: memref<8x1xi32, #tpu.memory_space<vmem>>, %arg5: memref<8x256xf32, #tpu.memory_space<vmem>>, %arg6: memref<8x1xf32, #tpu.memory_space<vmem>>) attributes {dimension_semantics = [#tpu.dimension_semantics<parallel>, #tpu.dimension_semantics<arbitrary>], iteration_bounds = array<i64: 1, 1>, scalar_prefetch = 0 : i64, scratch_operands = 0 : i64, tpu.core_type = #tpu.core_type<tc>, window_params = [{transform_indices = @transform_0, window_bounds = array<i64: 8, 128>}, {transform_indices = @transform_1, window_bounds = array<i64: 256, 128>}, {transform_indices = @transform_2, window_bounds = array<i64: 8, 1>}, {transform_indices = @transform_3, window_bounds = array<i64: 8, 256>}, {transform_indices = @transform_4, window_bounds = array<i64: 8, 1>}]} {
    %c0 = arith.constant 0 : index
    %c0_0 = arith.constant 0 : index
    %0 = vector.load %arg2[%c0, %c0_0] : memref<8x128xbf16, #tpu.memory_space<vmem>>, vector<8x128xbf16>
    %c0_1 = arith.constant 0 : index
    %c0_2 = arith.constant 0 : index
    %1 = vector.load %arg3[%c0_1, %c0_2] : memref<256x128xbf16, #tpu.memory_space<vmem>>, vector<256x128xbf16>
    %cst = arith.constant dense<0.000000e+00> : vector<8x256xf32>
    %2 = tpu.matmul %0, %1, %cst {dimension_numbers = #tpu.dot_dimension_numbers<[1], [1], [0], [0], [0, 0, 1, 0], [], []>} : vector<8x128xbf16>, vector<256x128xbf16>, vector<8x256xf32> -> vector<8x256xf32>
    %c0_3 = arith.constant 0 : index
    %c0_4 = arith.constant 0 : index
    %3 = vector.load %arg5[%c0_3, %c0_4] : memref<8x256xf32, #tpu.memory_space<vmem>>, vector<8x256xf32>
    tpu.vector_store %arg5[%c0_3, %c0_4], %2 {strides = array<i32>} : memref<8x256xf32, #tpu.memory_space<vmem>>, vector<8x256xf32>,
    %c0_5 = arith.constant 0 : index
    %c0_6 = arith.constant 0 : index
    %4 = vector.load %arg4[%c0_5, %c0_6] : memref<8x1xi32, #tpu.memory_space<vmem>>, vector<8x1xi32>
    %5 = tpu.iota {dimensions = array<i32: 1>} : vector<8x256xi32>
    %c256_i32 = arith.constant 256 : i32
    %6 = arith.muli %arg1, %c256_i32 : i32
    %7 = vector.broadcast %6 : i32 to vector<8x256xi32>
    %8 = arith.addi %5, %7 : vector<8x256xi32>
    %9 = vector.broadcast %4 : vector<8x1xi32> to vector<8x256xi32>
    %10 = arith.cmpi eq, %8, %9 : vector<8x256xi32>
    %11 = arith.extui %10 : vector<8x256xi1> to vector<8x256xi32>
    %12 = arith.sitofp %11 : vector<8x256xi32> to vector<8x256xf32>
    %13 = arith.mulf %2, %12 : vector<8x256xf32>
    %cst_7 = arith.constant dense<0.000000e+00> : vector<8xf32>
    %14 = vector.multi_reduction <add>, %13, %cst_7 [1] : vector<8x256xf32> to vector<8xf32>
    %15 = vector.shape_cast %14 : vector<8xf32> to vector<8x1xf32>
    %c0_i32 = arith.constant 0 : i32
    %16 = arith.cmpi eq, %arg1, %c0_i32 : i32
    %17 = arith.extui %16 : i1 to i32
    %c0_i32_8 = arith.constant 0 : i32
    %18 = arith.cmpi ne, %17, %c0_i32_8 : i32
    scf.if %18 {
      %24 = arith.extf %0 : vector<8x128xbf16> to vector<8x128xf32>
      %25 = arith.mulf %24, %24 : vector<8x128xf32>
      %cst_14 = arith.constant dense<0.000000e+00> : vector<8xf32>
      %26 = vector.multi_reduction <add>, %25, %cst_14 [1] : vector<8x128xf32> to vector<8xf32>
      %27 = vector.shape_cast %26 : vector<8xf32> to vector<8x1xf32>
      %c0_15 = arith.constant 0 : index
      %c0_16 = arith.constant 0 : index
      %28 = vector.load %arg6[%c0_15, %c0_16] : memref<8x1xf32, #tpu.memory_space<vmem>>, vector<8x1xf32>
      tpu.vector_store %arg6[%c0_15, %c0_16], %27 {strides = array<i32>} : memref<8x1xf32, #tpu.memory_space<vmem>>, vector<8x1xf32>,
    } else {
    }
    %c0_9 = arith.constant 0 : index
    %c0_10 = arith.constant 0 : index
    %19 = vector.load %arg6[%c0_9, %c0_10] : memref<8x1xf32, #tpu.memory_space<vmem>>, vector<8x1xf32>
    %cst_11 = arith.constant -5.000000e+00 : f32
    %20 = vector.broadcast %cst_11 : f32 to vector<8x1xf32>
    %21 = arith.mulf %20, %15 : vector<8x1xf32>
    %22 = arith.addf %19, %21 : vector<8x1xf32>
    %c0_12 = arith.constant 0 : index
    %c0_13 = arith.constant 0 : index
    %23 = vector.load %arg6[%c0_12, %c0_13] : memref<8x1xf32, #tpu.memory_space<vmem>>, vector<8x1xf32>
    tpu.vector_store %arg6[%c0_12, %c0_13], %22 {strides = array<i32>} : memref<8x1xf32, #tpu.memory_space<vmem>>, vector<8x1xf32>,
    return
  }
  func.func @transform_0(%arg0: i32, %arg1: i32) -> (i32, i32) {
    %c0_i32 = arith.constant 0 : i32
    %c0_i32_0 = arith.constant 0 : i32
    return %arg0, %c0_i32 : i32, i32
  }
  func.func @transform_1(%arg0: i32, %arg1: i32) -> (i32, i32) {
    %c0_i32 = arith.constant 0 : i32
    %c0_i32_0 = arith.constant 0 : i32
    return %arg1, %c0_i32 : i32, i32
  }
  func.func @transform_2(%arg0: i32, %arg1: i32) -> (i32, i32) {
    %c0_i32 = arith.constant 0 : i32
    %c0_i32_0 = arith.constant 0 : i32
    return %arg0, %c0_i32 : i32, i32
  }
  func.func @transform_3(%arg0: i32, %arg1: i32) -> (i32, i32) {
    %c0_i32 = arith.constant 0 : i32
    return %arg0, %arg1 : i32, i32
  }
  func.func @transform_4(%arg0: i32, %arg1: i32) -> (i32, i32) {
    %c0_i32 = arith.constant 0 : i32
    %c0_i32_0 = arith.constant 0 : i32
    return %arg0, %c0_i32 : i32, i32
  }
}

</mosaic_0001>

<bundles_post_ra>
// kernel: tpu_custom_call.1
= control target key start
LH: loop header
LB: loop body
LE: loop exit
PB: predicated region body
PF: predicated region fallthrough
CT: control target
= control target key end

     0   :  { %10 = vsyncpa [#allocation3], 0  ;;  %s439_s0 = inlined_call_operand.vmem [shape: bf16[8,128], index: 0, kind: input, shape index: {}]   ;;  %s440_s1 = inlined_call_operand.hbm [shape: bf16[256,128], index: 1, kind: input, shape index: {}]   ;;  %s441_s2 = inlined_call_operand.vmem [shape: s32[8,1], index: 2, kind: input, shape index: {}]   ;;  %s442_s3 = inlined_call_operand.hbm [shape: f32[8,256], index: 3, kind: output, shape index: {0}]   ;;  %s443_s4 = inlined_call_operand.vmem [shape: f32[8,1], index: 4, kind: output, shape index: {1}]  }
   0x1   :  { %11 = vsyncpa [#allocation4], 0  ;;  %s367_s15 = smov [#allocation2]   ;;  %s319_s19 = scalar_lea.hbm %s440_s1, 2048 }
   0x2   :  { %s19_s16 = sshll.u32 %s367_s15, 4  ;;  %p320_p0 = scmp.ne.s32.totalorder %s440_s1, %s319_s19  ;;  %s20_s16 = int_to_ptr.vmem [resolvable:$true] %s19_s16 }
   0x3   :  { %p323_p1 = scmp.lt.u32.totalorder %s319_s19, %s440_s1 }
   0x5   :  { %p325_p2 = pnand %p323_p1, %p320_p0 }
   0x7   :  { %328 = shalt.err (!%p325_p2)
}
   0x8   :  { %s329_s24 = scalar_lea.vmem %s20_s16, 2048  ;;  %p334_p4 = scmp.lt.s32.totalorder %s20_s16, %s20_s16 }
   0x9   :  { %p330_p3 = scmp.ne.s32.totalorder %s20_s16, %s329_s24  ;;  %p335_p5 = scmp.lt.s32.totalorder %s329_s24, %s329_s24 }
   0xb   :  { %p336_p6 = por %p335_p5, %p334_p4 }
   0xd   :  { %p337_p7 = pnand %p336_p6, %p330_p3 }
   0xf   :  { %340 = shalt.err (!%p337_p7)
}
  0x10   :  { %s368_s25 = smov 64   ;;  %s369_s26 = smov 4  }
  0x11   :  { %25 = dma.hbm_to_vmem [thread:$0]  %s440_s1, 2048, %s20_s16, [#allocation3], %s368_s25, %s368_s25, %s369_s26  }
  0x12   :  { %363 = dma.done.wait [#allocation3], 2048  }
  0x13   :  { %364 = vsyncadd [#allocation3], 4294965248  ;;  %v370_v0 = vmov 0   ;;  %v303_v1 = vld [vmem:[#allocation2 + $0x40] sm:$0xff]   ;;  %v305_v3 = vld [vmem:[#allocation2 + $0x48] sm:$0xff]   ;;  %vm234_vm0 = vcmask 7168   ;;  %v205_v23 = vlaneseq }
  0x14   :  { %302 = vset.pattern.permute.xlu0 %v370_v0  ;;  %v304_v2 = vld [vmem:[#allocation2] sm:$0xff]   ;;  %278 = vmatprep.subr.bf16.mxu0 %v303_v1  ;;  %v306_v4 = vld [vmem:[#allocation2 + $0x8] sm:$0xff]   ;;  %v307_v5 = vld [vmem:[#allocation2 + $0x50] sm:$0xff]   ;;  %v371_v26 = vmov 0.0   ;;  %s372_s6 = smov [#allocation5]  }
  0x15   :  { %279 = vmatpush3.bf16.xpose.msra.mxu0 %v304_v2  ;;  %v308_v6 = vld [vmem:[#allocation2 + $0x10] sm:$0xff]   ;;  %v309_v7 = vld [vmem:[#allocation2 + $0x58] sm:$0xff]   ;;  %v32_v8 = vld [vmem:[%s439_s0] sm:$0xf]  ;;  %v206_v24 = vand.u32 127, %v205_v23  ;;  %s247_s7 = sshll.u32 %s372_s6, 4  ;;  %s248_s7 = int_to_ptr.vmem [resolvable:$true] %s247_s7 }
  0x16   :  { %280 = vmatprep.subr.bf16.mxu0 %v305_v3  ;;  %v204_v9 = vld [vmem:[%s441_s2] sm:$0xff]  ;;  %294 = vmatprep.mubr.bf16.mxu0 %v32_v8  ;;  %v310_v10 = vld [vmem:[#allocation2 + $0x18] sm:$0xff]   ;;  %v313_v13 = vld [vmem:[#allocation2 + $0x68] sm:$0xff]   ;;  %v230_v16 = vunpack.c.l.bf16 %v32_v8  ;;  %s341_s8 = scalar_lea.vmem %s248_s7, 256  ;;  %p346_p9 = scmp.lt.s32.totalorder %s248_s7, %s248_s7 }
  0x17   :  { %213 = vperm.xlu0 %302, %v204_v9   ;;  %v311_v11 = vld [vmem:[#allocation2 + $0x60] sm:$0xff]   ;;  %v314_v14 = vld [vmem:[#allocation2 + $0x28] sm:$0xff]   ;;  %v315_v15 = vld [vmem:[#allocation2 + $0x70] sm:$0xff]   ;;  %v207_v25 = vadd.s32 128, %v206_v24  ;;  %p342_p8 = scmp.ne.s32.totalorder %s248_s7, %s341_s8  ;;  %p347_p10 = scmp.lt.s32.totalorder %s341_s8, %s341_s8 }
  0x18   :  { %v312_v12 = vld [vmem:[#allocation2 + $0x20] sm:$0xff]   ;;  %v231_v17 = vmul.f32 %v230_v16, %v230_v16  ;;  %v316_v18 = vld [vmem:[#allocation2 + $0x30] sm:$0xff]   ;;  %v317_v19 = vld [vmem:[#allocation2 + $0x78] sm:$0xff]  }
  0x19   :  { %v318_v20 = vld [vmem:[#allocation2 + $0x38] sm:$0xff]   ;;  %p348_p11 = por %p347_p10, %p346_p9 }
  0x1b   :  { %p349_p12 = pnand %p348_p11, %p342_p8 }
  0x1d   :  { %281 = vmatpush3.bf16.xpose.msra.mxu0 %v306_v4 }
  0x1e   :  { %282 = vmatprep.subr.bf16.mxu0 %v307_v5 }
  0x25   :  { %283 = vmatpush3.bf16.xpose.msra.mxu0 %v308_v6 }
  0x26   :  { %284 = vmatprep.subr.bf16.mxu0 %v309_v7 }
  0x2d   :  { %285 = vmatpush3.bf16.xpose.msra.mxu0 %v310_v10 }
  0x2e   :  { %286 = vmatprep.subr.bf16.mxu0 %v311_v11 }
  0x35   :  { %287 = vmatpush3.bf16.xpose.msra.mxu0 %v312_v12 }
  0x36   :  { %288 = vmatprep.subr.bf16.mxu0 %v313_v13  ;;  %232 = vadd.xlane.f32.xlu0 %v231_v17 }
  0x3d   :  { %289 = vmatpush3.bf16.xpose.msra.mxu0 %v314_v14 }
  0x3e   :  { %290 = vmatprep.subr.bf16.mxu0 %v315_v15 }
  0x45   :  { %291 = vmatpush3.bf16.xpose.msra.mxu0 %v316_v18 }
  0x46   :  { %292 = vmatprep.subr.bf16.mxu0 %v317_v19 }
  0x4d   :  { %293 = vmatpush3.bf16.xpose.msra.mxu0 %v318_v20 }
  0x54   :  { %295 = vmatmul.mubr.bf16.vlgmr.msra.gmra.mrb[0].mxu0 %v32_v8 }
  0x96   :  { %v214_v21 = vpop.permute.xlu0 %213 }
  0x97   :  { %vm215_vm1 = vcmp.eq.s32.totalorder %v206_v24, %v214_v21  ;;  %vm216_vm2 = vcmp.eq.s32.totalorder %v207_v25, %v214_v21 }
  0x98   :  { %v276_v27 = vsel %vm215_vm1, 1.0, %v371_v26  ;;  %v277_v28 = vsel %vm216_vm2, 1.0, %v371_v26 }
  0xc3   :  { %v233_v22 = vpop.xlane.xlu0 %232 }
  0xc4   :  { %235 = vst.msk [vmem:[%s443_s4] sm:$0xff] %vm234_vm0, %v233_v22 }
 0x127   :  { %v195_v29 = vpop.f32.mrb[0].mxu0 }
 0x128   :  { %202 = vst [vmem:[#allocation5] sm:$0xff] %v195_v29  ;;  %v221_v30 = vmul.f32 %v276_v27, %v195_v29  ;;  %v197_v31 = vpop.f32.mrb[1].mxu0 }
 0x129   :  { %203 = vst [vmem:[#allocation5 + $0x8] sm:$0xff] %v197_v31  ;;  %v222_v32 = vmul.f32 %v277_v28, %v197_v31  ;;  %v199_v33 = vpop.f32.mrb[2].mxu0 }
 0x12a   :  { %v200_v34 = vpop.f32.mrb[3].mxu0 }
 0x12b   :  { %v223_v35 = vadd.f32 %v222_v32, %v221_v30 }
 0x12d   :  { %224 = vadd.xlane.f32.xlu1 %v223_v35 }
 0x12e   :  { %352 = shalt.err (!%p349_p12)
}
 0x12f   :  { %s353_s11 = scalar_lea.hbm %s442_s3, 256 }
 0x130   :  { %p354_p13 = scmp.ne.s32.totalorder %s442_s3, %s353_s11  ;;  %p357_p0 = scmp.lt.u32.totalorder %s353_s11, %s442_s3 }
 0x132   :  { %p359_p1 = pnand %p357_p0, %p354_p13 }
 0x134   :  { %362 = shalt.err (!%p359_p1)
}
 0x135   :  { %250 = dma.vmem_to_hbm [thread:$0]  %s248_s7, 256, %s442_s3, [#allocation4]   ;;  %v236_v36 = vld [vmem:[%s443_s4] sm:$0xff] }
 0x1ba   :  { %v225_v37 = vpop.xlane.xlu1 %224 }
 0x1bb   :  { %v237_v38 = vmul.f32 -5.0, %v225_v37 }
 0x1bd   :  { %v238_v39 = vadd.f32 %v237_v38, %v236_v36 }
 0x1bf   :  { %240 = vst.msk [vmem:[%s443_s4] sm:$0xff] %vm234_vm0, %v238_v39 }
 0x1c0   :  { %365 = dma.done.wait [#allocation4], 256  }
 0x1c1   :  { %366 = vsyncadd [#allocation4], 4294967040 }
 0x1c2   :  { %258 = vsyncpa [#allocation3], 1 }
 0x1c3   :  { %259 = vsyncpa [#allocation4], 1 }

</bundles_post_ra>
